<compile_context>
chip_gen: v7x
topology: tpu7x:2x2x1
jax: 0.10.0
libtpu: 0.0.40
codegen_flags: <defaults>
</compile_context>

<pallas_src>
import functools

import jax
import jax.numpy as jnp
from jax.experimental import pallas as pl
from jax.experimental.pallas import tpu as pltpu

_LANE = 128      # vreg lane width
_SUBLANE = 8     # vreg sublane count (f32)


def _round_up(x, m):
    return (x + m - 1) // m * m


# --------------------------------------------------------------------------
# Kernel
# --------------------------------------------------------------------------
def _linear_qnet_kernel(x_ref, pk1_ref, pk2_ref, o_ref, xp_ref, *, hidden_size):
    """y = relu(x @ W1 + b1) @ W2 + b2 on one (tb, in_size) batch tile.

    pk1: (in_pad, h_pad)   rows [0, in_size) = W1, row in_size = b1, rest 0
    pk2: (h_pad, out_pad)  rows [0, hid)     = W2, row hid     = b2, rest 0
    xp : (tb, in_pad) VMEM scratch used to lane-pad x inside the kernel.
    """
    in_size = x_ref.shape[1]
    out_size = o_ref.shape[1]
    pdtype = pk1_ref.dtype

    # Build the lane-padded x tile in VMEM (no HBM padding pass): real data in
    # lanes [0, in_size), the folded-bias indicator 1.0 in lane in_size,
    # zeros in the remaining padding lanes.
    lane = jax.lax.broadcasted_iota(jnp.int32, xp_ref.shape, 1)
    xp_ref[...] = jnp.where(lane == in_size, 1.0, 0.0).astype(pdtype)
    xp_ref[:, :in_size] = x_ref[...].astype(pdtype)

    # Layer 1: MXU matmul with f32 accumulation; b1 comes in via W1 row
    # `in_size` and the indicator lane.  ReLU stays in f32 on the VPU.
    h = jnp.dot(xp_ref[...], pk1_ref[...], preferred_element_type=jnp.float32)
    h = jnp.maximum(h, 0.0)

    # Layer 2: all padded lanes of h are exactly zero after layer 1, so only
    # the bias-indicator lane `hidden_size` needs to be set to 1.0.
    lane_h = jax.lax.broadcasted_iota(jnp.int32, h.shape, 1)
    h = jnp.where(lane_h == hidden_size, 1.0, h)
    y = jnp.dot(h.astype(pk2_ref.dtype), pk2_ref[...],
                preferred_element_type=jnp.float32)

    # Store only the real output lanes (block last dim == full array dim).
    o_ref[...] = y[:, :out_size]


# --------------------------------------------------------------------------
# Parameter packing (done once, outside the hot path)
# --------------------------------------------------------------------------
def pack_linear_qnet_params(w1, b1, w2, b2, *, dtype=jnp.float32):
    """Pack the two Linear layers (biases folded into an extra weight row).

    w1: (input_size, hidden_size)    b1: (1, hidden_size) or (hidden_size,)
    w2: (hidden_size, output_size)   b2: (1, output_size) or (output_size,)
    (weights are the transpose of PyTorch nn.Linear's weight layout)
    """
    in_size, hid = w1.shape
    hid2, out_size = w2.shape
    assert hid == hid2

    in_pad = _round_up(in_size + 1, _LANE)   # +1 row for folded b1
    h_pad = _round_up(hid + 1, _LANE)        # +1 row for folded b2
    out_pad = _round_up(out_size, _LANE)

    b1 = jnp.reshape(b1, (hid,))
    b2 = jnp.reshape(b2, (out_size,))

    pk1 = jnp.zeros((in_pad, h_pad), dtype)
    pk1 = pk1.at[:in_size, :hid].set(w1.astype(dtype))
    pk1 = pk1.at[in_size, :hid].set(b1.astype(dtype))

    pk2 = jnp.zeros((h_pad, out_pad), dtype)
    pk2 = pk2.at[:hid, :out_size].set(w2.astype(dtype))
    pk2 = pk2.at[hid, :out_size].set(b2.astype(dtype))

    dims = dict(input_size=in_size, hidden_size=hid, output_size=out_size,
                in_pad=in_pad, h_pad=h_pad, out_pad=out_pad)
    return pk1, pk2, dims


# --------------------------------------------------------------------------
# Batch tiling
# --------------------------------------------------------------------------
def _pick_batch_tile(batch, *, max_tile=4096, large_threshold=1024):
    """Balanced, sublane-aligned batch tiles.

    Large batches always get >= 2 grid steps so v7x's second TensorCore has
    work; tiles are capped at `max_tile` rows (a few MiB/step of VMEM in f32,
    comfortably inside v7x's 64 MiB scoped budget).
    """
    b8 = _round_up(batch, _SUBLANE)
    n_steps = pl.cdiv(b8, max_tile)
    if b8 >= large_threshold:
        n_steps = max(n_steps, 2)
    tb = _round_up(pl.cdiv(b8, n_steps), _SUBLANE)
    b_pad = _round_up(b8, tb)
    return tb, b_pad


# --------------------------------------------------------------------------
# Forward wrapper
# --------------------------------------------------------------------------
def linear_qnet_forward(x, pk1, pk2, dims, *, max_block_batch=4096):
    """Fused LinearQNet forward: x (B, input_size) -> (B, output_size) f32."""
    B, in_size = x.shape
    assert in_size == dims["input_size"]
    in_pad, h_pad, out_pad = dims["in_pad"], dims["h_pad"], dims["out_pad"]
    out_size = dims["output_size"]

    tb, b_pad = _pick_batch_tile(B, max_tile=max_block_batch)

    # Only the (cheap) batch-row padding is done in HBM; lane padding happens
    # inside the kernel.  Padded rows are sliced away below.
    x_in = x if b_pad == B else jnp.zeros((b_pad, in_size), x.dtype).at[:B].set(x)

    kernel = functools.partial(_linear_qnet_kernel,
                               hidden_size=dims["hidden_size"])

    flops = 2 * b_pad * (in_pad * h_pad + h_pad * out_pad)
    bytes_accessed = (B * in_size * x.dtype.itemsize
                      + pk1.size * pk1.dtype.itemsize
                      + pk2.size * pk2.dtype.itemsize
                      + B * out_size * 4)

    out = pl.pallas_call(
        kernel,
        out_shape=jax.ShapeDtypeStruct((b_pad, out_size), jnp.float32),
        grid_spec=pltpu.PrefetchScalarGridSpec(
            num_scalar_prefetch=0,
            grid=(b_pad // tb,),
            in_specs=[
                # Unpadded x block: last dim == full array dim (legal, one
                # contiguous DMA per tile).
                pl.BlockSpec((tb, in_size), lambda i: (i, 0)),
                pl.BlockSpec(pk1.shape, lambda i: (0, 0)),   # resident weights
                pl.BlockSpec(pk2.shape, lambda i: (0, 0)),   # resident weights
            ],
            # Unpadded output block: only the real lanes hit HBM.
            out_specs=pl.BlockSpec((tb, out_size), lambda i: (i, 0)),
            scratch_shapes=[pltpu.VMEM((tb, in_pad), pk1.dtype)],
        ),
        compiler_params=pltpu.CompilerParams(
            dimension_semantics=("parallel",),
            vmem_limit_bytes=32 * 1024 * 1024),
        cost_estimate=pl.CostEstimate(flops=flops, transcendentals=0,
                                      bytes_accessed=bytes_accessed),
    )(x_in, pk1, pk2)

    return out if b_pad == B else out[:B]


# --------------------------------------------------------------------------
# Init (matches nn.Linear's U(-1/sqrt(fan_in), 1/sqrt(fan_in)))
# --------------------------------------------------------------------------
def init_linear_qnet_params(key, input_size, hidden_size, output_size):
    k1, k2, k3, k4 = jax.random.split(key, 4)
    bound1 = 1.0 / jnp.sqrt(jnp.float32(input_size))
    bound2 = 1.0 / jnp.sqrt(jnp.float32(hidden_size))
    w1 = jax.random.uniform(k1, (input_size, hidden_size), jnp.float32,
                            minval=-bound1, maxval=bound1)
    b1 = jax.random.uniform(k2, (1, hidden_size), jnp.float32,
                            minval=-bound1, maxval=bound1)
    w2 = jax.random.uniform(k3, (hidden_size, output_size), jnp.float32,
                            minval=-bound2, maxval=bound2)
    b2 = jax.random.uniform(k4, (1, output_size), jnp.float32,
                            minval=-bound2, maxval=bound2)
    return w1, b1, w2, b2


if __name__ == "__main__":
    input_size = 11     # flat snake-game state vector
    hidden_size = 32
    output_size = 3

    key = jax.random.PRNGKey(0)
    key_x, key_x2, key_p = jax.random.split(key, 3)

    w1, b1, w2, b2 = init_linear_qnet_params(key_p, input_size, hidden_size,
                                             output_size)

    def reference(x):
        return jnp.maximum(x @ w1 + b1, 0.0) @ w2 + b2

    # ---------------- f32 path (exact reference match) ----------------
    pk1, pk2, dims = pack_linear_qnet_params(w1, b1, w2, b2,
                                             dtype=jnp.float32)

    batch = 2
    x = jax.random.normal(key_x, (batch, input_size), jnp.float32)
    out = jax.block_until_ready(linear_qnet_forward(x, pk1, pk2, dims))
    assert out.shape == (batch, output_size)
    assert jnp.allclose(out, reference(x), atol=1e-5, rtol=1e-5)

    # Larger, non-multiple batch: 2 balanced grid steps (tb = 520), batch
    # padding sliced away.  Exercises the pipelined / megacore-parallel path.
    big_batch = 1037
    x_big = jax.random.normal(key_x2, (big_batch, input_size), jnp.float32)
    out_big = jax.block_until_ready(linear_qnet_forward(x_big, pk1, pk2, dims))
    assert out_big.shape == (big_batch, output_size)
    assert jnp.allclose(out_big, reference(x_big), atol=1e-4, rtol=1e-4)

    # ---------------- bf16 weight/activation path (v6e/v7x MXU) ----------------
    pk1_b, pk2_b, dims_b = pack_linear_qnet_params(w1, b1, w2, b2,
                                                   dtype=jnp.bfloat16)
    out_b = jax.block_until_ready(
        linear_qnet_forward(x_big, pk1_b, pk2_b, dims_b))
    # Reference with the same bf16 operand casts (accumulation stays f32).
    c = lambda a: a.astype(jnp.bfloat16).astype(jnp.float32)
    h_ref = jnp.maximum(c(x_big) @ c(w1) + c(b1), 0.0)
    y_ref = c(h_ref) @ c(w2) + c(b2)
    assert out_b.shape == (big_batch, output_size)
    assert jnp.allclose(out_b, y_ref, atol=2e-2, rtol=2e-2)

    print("KERNEL_OK")
</pallas_src>

<mosaic_0001>
module attributes {stable_mosaic.version = 11 : i64} {
  func.func @_linear_qnet_kernel(%arg0: i32, %arg1: memref<8x11xf32, #tpu.memory_space<vmem>>, %arg2: memref<128x128xf32, #tpu.memory_space<vmem>>, %arg3: memref<128x128xf32, #tpu.memory_space<vmem>>, %arg4: memref<8x3xf32, #tpu.memory_space<vmem>>, %arg5: memref<8x128xf32, #tpu.memory_space<vmem>>) attributes {dimension_semantics = [#tpu.dimension_semantics<parallel>], iteration_bounds = array<i64: 1>, scalar_prefetch = 0 : i64, scratch_operands = 1 : i64, tpu.core_type = #tpu.core_type<tc>, window_params = [{transform_indices = @transform_0, window_bounds = array<i64: 8, 11>}, {pipeline_mode = #tpu.pipeline_mode<synchronous>, transform_indices = @transform_1, window_bounds = array<i64: 128, 128>}, {pipeline_mode = #tpu.pipeline_mode<synchronous>, transform_indices = @transform_2, window_bounds = array<i64: 128, 128>}, {transform_indices = @transform_3, window_bounds = array<i64: 8, 3>}]} {
    %0 = tpu.iota {dimensions = array<i32: 1>} : vector<8x128xi32>
    %c11_i32 = arith.constant 11 : i32
    %1 = vector.broadcast %c11_i32 : i32 to vector<8x128xi32>
    %2 = arith.cmpi eq, %0, %1 : vector<8x128xi32>
    %cst = arith.constant 1.000000e+00 : f32
    %cst_0 = arith.constant 0.000000e+00 : f32
    %3 = vector.broadcast %cst : f32 to vector<8x128xf32>
    %4 = vector.broadcast %cst_0 : f32 to vector<8x128xf32>
    %5 = arith.select %2, %3, %4 : vector<8x128xi1>, vector<8x128xf32>
    %c0 = arith.constant 0 : index
    %c0_1 = arith.constant 0 : index
    %6 = vector.load %arg5[%c0, %c0_1] : memref<8x128xf32, #tpu.memory_space<vmem>>, vector<8x128xf32>
    tpu.vector_store %arg5[%c0, %c0_1], %5 {strides = array<i32>} : memref<8x128xf32, #tpu.memory_space<vmem>>, vector<8x128xf32>,
    %c0_2 = arith.constant 0 : index
    %c0_3 = arith.constant 0 : index
    %7 = vector.load %arg1[%c0_2, %c0_3] : memref<8x11xf32, #tpu.memory_space<vmem>>, vector<8x11xf32>
    %c0_4 = arith.constant 0 : index
    %c0_5 = arith.constant 0 : index
    %8 = vector.load %arg5[%c0_4, %c0_5] : memref<8x128xf32, #tpu.memory_space<vmem>>, vector<8x11xf32>
    tpu.vector_store %arg5[%c0_4, %c0_5], %7 {strides = array<i32>} : memref<8x128xf32, #tpu.memory_space<vmem>>, vector<8x11xf32>,
    %c0_6 = arith.constant 0 : index
    %c0_7 = arith.constant 0 : index
    %9 = vector.load %arg5[%c0_6, %c0_7] : memref<8x128xf32, #tpu.memory_space<vmem>>, vector<8x128xf32>
    %c0_8 = arith.constant 0 : index
    %c0_9 = arith.constant 0 : index
    %10 = vector.load %arg2[%c0_8, %c0_9] : memref<128x128xf32, #tpu.memory_space<vmem>>, vector<128x128xf32>
    %cst_10 = arith.constant dense<0.000000e+00> : vector<8x128xf32>
    %11 = tpu.matmul %9, %10, %cst_10 {dimension_numbers = #tpu.dot_dimension_numbers<[1], [0], [0], [1], [0, 0, 1, 1], [], []>} : vector<8x128xf32>, vector<128x128xf32>, vector<8x128xf32> -> vector<8x128xf32>
    %cst_11 = arith.constant 0.000000e+00 : f32
    %12 = vector.broadcast %cst_11 : f32 to vector<8x128xf32>
    %13 = arith.maximumf %11, %12 : vector<8x128xf32>
    %14 = tpu.iota {dimensions = array<i32: 1>} : vector<8x128xi32>
    %c32_i32 = arith.constant 32 : i32
    %15 = vector.broadcast %c32_i32 : i32 to vector<8x128xi32>
    %16 = arith.cmpi eq, %14, %15 : vector<8x128xi32>
    %cst_12 = arith.constant 1.000000e+00 : f32
    %17 = vector.broadcast %cst_12 : f32 to vector<8x128xf32>
    %18 = arith.select %16, %17, %13 : vector<8x128xi1>, vector<8x128xf32>
    %c0_13 = arith.constant 0 : index
    %c0_14 = arith.constant 0 : index
    %19 = vector.load %arg3[%c0_13, %c0_14] : memref<128x128xf32, #tpu.memory_space<vmem>>, vector<128x128xf32>
    %cst_15 = arith.constant dense<0.000000e+00> : vector<8x128xf32>
    %20 = tpu.matmul %18, %19, %cst_15 {dimension_numbers = #tpu.dot_dimension_numbers<[1], [0], [0], [1], [0, 0, 1, 1], [], []>} : vector<8x128xf32>, vector<128x128xf32>, vector<8x128xf32> -> vector<8x128xf32>
    %21 = vector.extract_strided_slice %20 {offsets = [0, 0], sizes = [8, 3], strides = [1, 1]} : vector<8x128xf32> to vector<8x3xf32>
    %c0_16 = arith.constant 0 : index
    %c0_17 = arith.constant 0 : index
    %22 = vector.load %arg4[%c0_16, %c0_17] : memref<8x3xf32, #tpu.memory_space<vmem>>, vector<8x3xf32>
    tpu.vector_store %arg4[%c0_16, %c0_17], %21 {strides = array<i32>} : memref<8x3xf32, #tpu.memory_space<vmem>>, vector<8x3xf32>,
    return
  }
  func.func @transform_0(%arg0: i32) -> (i32, i32) {
    %c0_i32 = arith.constant 0 : i32
    %c0_i32_0 = arith.constant 0 : i32
    return %arg0, %c0_i32 : i32, i32
  }
  func.func @transform_1(%arg0: i32) -> (i32, i32) {
    %c0_i32 = arith.constant 0 : i32
    %c0_i32_0 = arith.constant 0 : i32
    %c0_i32_1 = arith.constant 0 : i32
    return %c0_i32, %c0_i32_0 : i32, i32
  }
  func.func @transform_2(%arg0: i32) -> (i32, i32) {
    %c0_i32 = arith.constant 0 : i32
    %c0_i32_0 = arith.constant 0 : i32
    %c0_i32_1 = arith.constant 0 : i32
    return %c0_i32, %c0_i32_0 : i32, i32
  }
  func.func @transform_3(%arg0: i32) -> (i32, i32) {
    %c0_i32 = arith.constant 0 : i32
    %c0_i32_0 = arith.constant 0 : i32
    return %arg0, %c0_i32 : i32, i32
  }
}

</mosaic_0001>

<bundles_post_ra>
// kernel: tpu_custom_call.1
= control target key start
LH: loop header
LB: loop body
LE: loop exit
PB: predicated region body
PF: predicated region fallthrough
CT: control target
= control target key end

     0   :  { %8 = vsyncpa [#allocation4], 0  ;;  %s568_s0 = inlined_call_operand.hbm [shape: f32[8,11], index: 0, kind: input, shape index: {}]   ;;  %s569_s1 = inlined_call_operand.hbm [shape: f32[128,128], index: 1, kind: input, shape index: {}]   ;;  %s570_s2 = inlined_call_operand.hbm [shape: f32[128,128], index: 2, kind: input, shape index: {}]   ;;  %s571_s3 = inlined_call_operand.vmem [shape: f32[8,3], index: 3, kind: output, shape index: {}]  }
   0x1   :  { %9 = vsyncpa [#allocation6], 0  ;;  %s475_s12 = smov [#allocation5]   ;;  %s405_s16 = scalar_lea.hbm %s569_s1, 2048 }
   0x2   :  { %s25_s13 = sshll.u32 %s475_s12, 4  ;;  %p406_p0 = scmp.ne.s32.totalorder %s569_s1, %s405_s16  ;;  %s26_s13 = int_to_ptr.vmem [resolvable:$true] %s25_s13 }
   0x3   :  { %p409_p1 = scmp.lt.u32.totalorder %s405_s16, %s569_s1 }
   0x5   :  { %p411_p2 = pnand %p409_p1, %p406_p0 }
   0x7   :  { %414 = shalt.err (!%p411_p2)
}
   0x8   :  { %s415_s21 = scalar_lea.vmem %s26_s13, 2048  ;;  %p420_p4 = scmp.lt.s32.totalorder %s26_s13, %s26_s13 }
   0x9   :  { %p416_p3 = scmp.ne.s32.totalorder %s26_s13, %s415_s21  ;;  %p421_p5 = scmp.lt.s32.totalorder %s415_s21, %s415_s21 }
   0xb   :  { %p422_p6 = por %p421_p5, %p420_p4 }
   0xd   :  { %p423_p7 = pnand %p422_p6, %p416_p3 }
   0xf   :  { %426 = shalt.err (!%p423_p7)
}
  0x10   :  { %s476_s22 = smov 128   ;;  %s477_s23 = smov 8  }
  0x11   :  { %31 = dma.hbm_to_vmem [thread:$0]  %s569_s1, 2048, %s26_s13, [#allocation6], %s476_s22, %s476_s22, %s477_s23  }
  0x12   :  { %s478_s26 = smov [#allocation3]   ;;  %s479_s28 = smov [#allocation7]  }
  0x13   :  { %s16_s27 = sshll.u32 %s478_s26, 4  ;;  %s37_s29 = sshll.u32 %s479_s28, 4  ;;  %s17_s27 = int_to_ptr.vmem [resolvable:$true] %s16_s27  ;;  %s38_s29 = int_to_ptr.vmem [resolvable:$true] %s37_s29 }
  0x14   :  { %s427_s5 = scalar_lea.hbm %s568_s0, 128 }
  0x15   :  { %p428_p8 = scmp.ne.s32.totalorder %s568_s0, %s427_s5  ;;  %p431_p9 = scmp.lt.u32.totalorder %s427_s5, %s568_s0 }
  0x17   :  { %p433_p10 = pnand %p431_p9, %p428_p8 }
  0x19   :  { %436 = shalt.err (!%p433_p10)
}
  0x1a   :  { %s437_s1 = scalar_lea.vmem %s17_s27, 128  ;;  %p442_p12 = scmp.lt.s32.totalorder %s17_s27, %s17_s27 }
  0x1b   :  { %p438_p11 = scmp.ne.s32.totalorder %s17_s27, %s437_s1  ;;  %p443_p13 = scmp.lt.s32.totalorder %s437_s1, %s437_s1 }
  0x1d   :  { %p444_p0 = por %p443_p13, %p442_p12 }
  0x1f   :  { %p445_p1 = pnand %p444_p0, %p438_p11 }
  0x21   :  { %448 = shalt.err (!%p445_p1)
}
  0x22   :  { %19 = dma.hbm_to_vmem [thread:$0]  %s568_s0, 128, %s17_s27, [#allocation4]  }
  0x23   :  { %s449_s14 = scalar_lea.hbm %s570_s2, 2048 }
  0x24   :  { %p450_p2 = scmp.ne.s32.totalorder %s570_s2, %s449_s14  ;;  %p453_p3 = scmp.lt.u32.totalorder %s449_s14, %s570_s2 }
  0x26   :  { %p455_p4 = pnand %p453_p3, %p450_p2 }
  0x28   :  { %458 = shalt.err (!%p455_p4)
}
  0x29   :  { %s459_s19 = scalar_lea.vmem %s38_s29, 2048  ;;  %p464_p6 = scmp.lt.s32.totalorder %s38_s29, %s38_s29 }
  0x2a   :  { %p460_p5 = scmp.ne.s32.totalorder %s38_s29, %s459_s19  ;;  %p465_p7 = scmp.lt.s32.totalorder %s459_s19, %s459_s19 }
  0x2c   :  { %p466_p8 = por %p465_p7, %p464_p6 }
  0x2e   :  { %p467_p9 = pnand %p466_p8, %p460_p5 }
  0x30   :  { %470 = shalt.err (!%p467_p9)
}
  0x31   :  { %43 = dma.hbm_to_vmem [thread:$0]  %s570_s2, 2048, %s38_s29, [#allocation6], %s476_s22, %s476_s22, %s477_s23  }
  0x32   :  { %471 = dma.done.wait [#allocation4], 128  }
  0x33   :  { %472 = vsyncadd [#allocation4], 4294967168 }
  0x34   :  { %473 = dma.done.wait [#allocation6], 4096  }
  0x35   :  { %474 = vsyncadd [#allocation6], 4294963200  ;;  %v53_v0 = vlaneseq  ;;  %v480_v1 = vmov 0.0|0.0   ;;  %vm481_vm0 = vmmov 0   ;;  %v482_v3 = vmov 0.0   ;;  %v62_v5 = vld [vmem:[#allocation5] sm:$0xff] }
  0x36   :  { %349 = vmatprep.subr.bf16.mxu0 %v480_v1  ;;  %373 = vmatprep.subr.bf16.mxu1 %v480_v1  ;;  %v63_v6 = vld [vmem:[#allocation5 + $0x8] sm:$0xff]  ;;  %v64_v7 = vld [vmem:[#allocation5 + $0x10] sm:$0xff]  ;;  %v65_v9 = vld [vmem:[#allocation5 + $0x18] sm:$0xff]  ;;  %vm59_vm2 = vcmask 89088   ;;  %vm237_vm4 = vcmask 23552  }
  0x37   :  { %v547_v2 = vand.u32 127, %v53_v0  ;;  %311 = vmatprep.mubr.msk.f32.mxu0 %vm481_vm0, %v482_v3  ;;  %346 = vmatprep.mubr.msk.f32.mxu1 %vm481_vm0, %v482_v3  ;;  %v350_v8 = vpack.c.bf16 %v63_v6, %v62_v5  ;;  %v353_v10 = vpack.c.bf16 %v65_v9, %v64_v7  ;;  %v66_v11 = vld [vmem:[#allocation5 + $0x20] sm:$0xff]  ;;  %v67_v12 = vld [vmem:[#allocation5 + $0x28] sm:$0xff]  ;;  %v58_v13 = vld [vmem:[#allocation3] sm:$0xff] }
  0x38   :  { %v151_v14 = vld [vmem:[#allocation7] sm:$0xff]  ;;  %v152_v15 = vld [vmem:[#allocation7 + $0x8] sm:$0xff]  ;;  %v153_v16 = vld [vmem:[#allocation7 + $0x10] sm:$0xff]  ;;  %v356_v18 = vpack.c.bf16 %v67_v12, %v66_v11 }
  0x39   :  { %vm55_vm1 = vcmp.eq.s32.totalorder %v547_v2, 11  ;;  %351 = vmatpush3.bf16.msra.mxu0 %v350_v8  ;;  %v154_v17 = vld [vmem:[#allocation7 + $0x18] sm:$0xff]  ;;  %v374_v19 = vpack.c.bf16 %v152_v15, %v151_v14  ;;  %v68_v20 = vld [vmem:[#allocation5 + $0x30] sm:$0xff]  ;;  %v155_v23 = vld [vmem:[#allocation7 + $0x20] sm:$0xff]  ;;  %vm149_vm3 = vcmp.eq.s32.totalorder %v547_v2, 32 }
  0x3a   :  { %v56_v4 = vsel %vm55_vm1, 1.0, %v482_v3  ;;  %352 = vmatprep.subr.bf16.mxu0 %v480_v1  ;;  %v69_v21 = vld [vmem:[#allocation5 + $0x38] sm:$0xff]  ;;  %v377_v22 = vpack.c.bf16 %v154_v17, %v153_v16  ;;  %v156_v24 = vld [vmem:[#allocation7 + $0x28] sm:$0xff]  ;;  %v70_v26 = vld [vmem:[#allocation5 + $0x40] sm:$0xff] }
  0x3b   :  { %57 = vst [vmem:[#allocation2] sm:$0xff] %v56_v4  ;;  %375 = vmatpush3.bf16.msra.mxu1 %v374_v19  ;;  %v359_v25 = vpack.c.bf16 %v69_v21, %v68_v20  ;;  %v71_v27 = vld [vmem:[#allocation5 + $0x48] sm:$0xff]  ;;  %v380_v28 = vpack.c.bf16 %v156_v24, %v155_v23  ;;  %v157_v29 = vld [vmem:[#allocation7 + $0x30] sm:$0xff]  ;;  %v158_v30 = vld [vmem:[#allocation7 + $0x38] sm:$0xff] }
  0x3c   :  { %60 = vst.msk [vmem:[#allocation2] sm:$0xff] %vm59_vm2, %v58_v13  ;;  %376 = vmatprep.subr.bf16.mxu1 %v480_v1  ;;  %v362_v31 = vpack.c.bf16 %v71_v27, %v70_v26  ;;  %v72_v32 = vld [vmem:[#allocation5 + $0x50] sm:$0xff]  ;;  %v73_v33 = vld [vmem:[#allocation5 + $0x58] sm:$0xff]  ;;  %v383_v34 = vpack.c.bf16 %v158_v30, %v157_v29  ;;  %v159_v35 = vld [vmem:[#allocation7 + $0x40] sm:$0xff] }
  0x3d   :  { %354 = vmatpush3.bf16.msra.mxu0 %v353_v10  ;;  %v160_v36 = vld [vmem:[#allocation7 + $0x48] sm:$0xff]  ;;  %v365_v37 = vpack.c.bf16 %v73_v33, %v72_v32  ;;  %v74_v38 = vld [vmem:[#allocation5 + $0x60] sm:$0xff]  ;;  %v161_v41 = vld [vmem:[#allocation7 + $0x50] sm:$0xff] }
  0x3e   :  { %355 = vmatprep.subr.bf16.mxu0 %v480_v1  ;;  %v75_v39 = vld [vmem:[#allocation5 + $0x68] sm:$0xff]  ;;  %v386_v40 = vpack.c.bf16 %v160_v36, %v159_v35  ;;  %v162_v42 = vld [vmem:[#allocation7 + $0x58] sm:$0xff]  ;;  %v76_v44 = vld [vmem:[#allocation5 + $0x70] sm:$0xff] }
  0x3f   :  { %378 = vmatpush3.bf16.msra.mxu1 %v377_v22  ;;  %v368_v43 = vpack.c.bf16 %v75_v39, %v74_v38  ;;  %v77_v45 = vld [vmem:[#allocation5 + $0x78] sm:$0xff]  ;;  %v389_v46 = vpack.c.bf16 %v162_v42, %v161_v41  ;;  %v163_v47 = vld [vmem:[#allocation7 + $0x60] sm:$0xff]  ;;  %v164_v48 = vld [vmem:[#allocation7 + $0x68] sm:$0xff] }
  0x40   :  { %379 = vmatprep.subr.bf16.mxu1 %v480_v1  ;;  %v371_v49 = vpack.c.bf16 %v77_v45, %v76_v44  ;;  %v392_v50 = vpack.c.bf16 %v164_v48, %v163_v47  ;;  %v165_v52 = vld [vmem:[#allocation7 + $0x70] sm:$0xff]  ;;  %v166_v53 = vld [vmem:[#allocation7 + $0x78] sm:$0xff] }
  0x41   :  { %357 = vmatpush3.bf16.msra.mxu0 %v356_v18  ;;  %v395_v54 = vpack.c.bf16 %v166_v53, %v165_v52 }
  0x42   :  { %358 = vmatprep.subr.bf16.mxu0 %v480_v1 }
  0x43   :  { %381 = vmatpush3.bf16.msra.mxu1 %v380_v28  ;;  %v61_v51 = vld [vmem:[#allocation2] sm:$0xff] }
  0x44   :  { %382 = vmatprep.subr.bf16.mxu1 %v480_v1 }
  0x45   :  { %360 = vmatpush3.bf16.msra.mxu0 %v359_v25 }
  0x46   :  { %361 = vmatprep.subr.bf16.mxu0 %v480_v1 }
  0x47   :  { %384 = vmatpush3.bf16.msra.mxu1 %v383_v34 }
  0x48   :  { %385 = vmatprep.subr.bf16.mxu1 %v480_v1 }
  0x49   :  { %363 = vmatpush3.bf16.msra.mxu0 %v362_v31 }
  0x4a   :  { %364 = vmatprep.subr.bf16.mxu0 %v480_v1 }
  0x4b   :  { %387 = vmatpush3.bf16.msra.mxu1 %v386_v40 }
  0x4c   :  { %388 = vmatprep.subr.bf16.mxu1 %v480_v1 }
  0x4d   :  { %366 = vmatpush3.bf16.msra.mxu0 %v365_v37 }
  0x4e   :  { %367 = vmatprep.subr.bf16.mxu0 %v480_v1 }
  0x4f   :  { %390 = vmatpush3.bf16.msra.mxu1 %v389_v46 }
  0x50   :  { %391 = vmatprep.subr.bf16.mxu1 %v480_v1 }
  0x51   :  { %369 = vmatpush3.bf16.msra.mxu0 %v368_v43 }
  0x52   :  { %370 = vmatprep.subr.bf16.mxu0 %v480_v1 }
  0x53   :  { %393 = vmatpush3.bf16.msra.mxu1 %v392_v50 }
  0x54   :  { %394 = vmatprep.subr.bf16.mxu1 %v480_v1 }
  0x55   :  { %372 = vmatpush3.bf16.msra.mxu0 %v371_v49 }
  0x57   :  { %396 = vmatpush3.bf16.msra.mxu1 %v395_v54 }
  0x58   :  { %312 = vmatmul.mubr.f32.vlgmr.msra.gmra.mrb[0].mxu0 %v61_v51 }
 0x12b   :  { %v144_v55 = vpop.f32.mrb[0].mxu0 }
 0x12c   :  { %v148_v56 = vmax.f32 %v144_v55, 0.0  ;;  %v313_v57 = vpop.f32.mrb[1].mxu0 }
 0x12e   :  { %v150_v58 = vsel %vm149_vm3, 1.0, %v148_v56 }
 0x12f   :  { %347 = vmatmul.mubr.f32.vlgmr.msra.gmra.mrb[0].mxu1 %v150_v58 }
 0x202   :  { %v233_v59 = vpop.f32.mrb[0].mxu1 }
 0x203   :  { %238 = vst.msk [vmem:[%s571_s3] sm:$0xff] %vm237_vm4, %v233_v59  ;;  %v348_v60 = vpop.f32.mrb[1].mxu1 }
 0x204   :  { %243 = vsyncpa [#allocation4], 1 }
 0x205   :  { %244 = vsyncpa [#allocation6], 1 }

</bundles_post_ra>
